<compile_context>
chip_gen: v5e
topology: v5e:2x2
jax: 0.10.0
libtpu: 0.0.40
codegen_flags: <defaults>
</compile_context>

<pallas_src>
import functools

import jax
import jax.numpy as jnp
from jax.experimental import pallas as pl
from jax.experimental.pallas import tpu as pltpu

EPS = 1e-5            # nn.BatchNorm1d default eps
NUM_CLASSES = 10
PAD_CLASSES = 128     # lane-dense padded width of the final layer
FUSED_MAX_ROWS = 1024 # single-kernel path gate (VMEM-safe on v5e/v6e/v7x)
VMEM_LIMIT_BYTES = 32 * 1024 * 1024


def _round_up(a, b):
    return (a + b - 1) // b * b


# --------------------------- in-kernel helpers ---------------------------

def _masked_softmax(logits):
    """Softmax over the first NUM_CLASSES lanes of a 128-wide padded slab."""
    lane = jax.lax.broadcasted_iota(jnp.int32, logits.shape, 1)
    logits = jnp.where(lane < NUM_CLASSES, logits, -1e30)
    m = jnp.max(logits, axis=-1, keepdims=True)
    e = jnp.exp(logits - m)
    denom = jnp.sum(e, axis=-1, keepdims=True)
    r = pl.reciprocal(denom, approx=True)   # EUP slot
    r = r * (2.0 - denom * r)               # one Newton step -> ~f32 accurate
    return e * r


def _two_rows(psum, psq):
    """Pack two (1, W) partials into one (2, W) block without concat/gather."""
    sub = jax.lax.broadcasted_iota(jnp.int32, (2, psum.shape[1]), 0)
    return jnp.where(sub == 0, psum, psq)


def _row_mask(tm, n_scalar):
    """(tm, 1) bool mask of globally-valid rows for the current grid step."""
    rid = pl.program_id(0) * tm + jax.lax.broadcasted_iota(jnp.int32, (tm, 1), 0)
    return rid < n_scalar


# --------------------------- tiled-path kernels ---------------------------

def _linear1_kernel(n_ref, x_ref, w1_ref, b1_ref, h1_ref, s1_ref):
    # f32 x tile -> bf16 in-kernel; MXU bf16 matmul with f32 accumulation.
    h1 = jnp.dot(x_ref[...].astype(jnp.bfloat16), w1_ref[...],
                 preferred_element_type=jnp.float32) + b1_ref[...]
    # BN1 partials over valid (non-padded) rows, in f32 BEFORE the bf16 cast.
    hm = jnp.where(_row_mask(x_ref.shape[0], n_ref[0]), h1, 0.0)
    psum = jnp.sum(hm, axis=0, keepdims=True)
    psq = jnp.sum(hm * hm, axis=0, keepdims=True)
    s1_ref[0] = _two_rows(psum, psq)
    h1_ref[...] = h1.astype(jnp.bfloat16)


def _bn_relu_linear2_kernel(n_ref, bn1_ref, h1_ref, w2_ref, b2_ref,
                            h2_ref, s2_ref):
    # BN folded into one FMA (scale/shift precomputed from stage-1 partials),
    # fused with ReLU, then Linear(256 -> 128).
    a = jnp.maximum(h1_ref[...].astype(jnp.float32) * bn1_ref[0] + bn1_ref[1],
                    0.0)
    h2 = jnp.dot(a.astype(jnp.bfloat16), w2_ref[...],
                 preferred_element_type=jnp.float32) + b2_ref[...]
    hm = jnp.where(_row_mask(h1_ref.shape[0], n_ref[0]), h2, 0.0)
    psum = jnp.sum(hm, axis=0, keepdims=True)
    psq = jnp.sum(hm * hm, axis=0, keepdims=True)
    s2_ref[0] = _two_rows(psum, psq)
    h2_ref[...] = h2.astype(jnp.bfloat16)


def _bn_relu_linear3_softmax_kernel(bn2_ref, h2_ref, w3_ref, b3_ref, o_ref):
    a = jnp.maximum(h2_ref[...].astype(jnp.float32) * bn2_ref[0] + bn2_ref[1],
                    0.0)
    logits = jnp.dot(a.astype(jnp.bfloat16), w3_ref[...],
                     preferred_element_type=jnp.float32) + b3_ref[...]
    o_ref[...] = _masked_softmax(logits)


# --------------------------- fused single-call kernel ---------------------------

def _fused_kernel(bn_ref, x_ref, w1_ref, b1_ref, w2_ref, b2_ref,
                  w3_ref, b3_ref, o_ref):
    rows = x_ref.shape[0]   # no row padding on this path: every row is valid

    # ---- Linear(784 -> 256) ----
    h1 = jnp.dot(x_ref[...].astype(jnp.bfloat16), w1_ref[...],
                 preferred_element_type=jnp.float32) + b1_ref[...]
    # ---- BN1 full-batch stats (E[h], E[h^2] - mu^2; f32; mu << sigma here so
    #      the one-pass form has no cancellation issue) ----
    cnt1 = float(rows * 256)
    mu1 = jnp.sum(h1) / cnt1
    var1 = jnp.maximum(jnp.sum(h1 * h1) / cnt1 - mu1 * mu1, 0.0)
    scale1 = bn_ref[0] * jax.lax.rsqrt(var1 + EPS)
    shift1 = bn_ref[1] - mu1 * scale1
    # Match the tiled path exactly: BN is applied to the bf16-stored h1.
    h1b = h1.astype(jnp.bfloat16).astype(jnp.float32)
    a1 = jnp.maximum(h1b * scale1 + shift1, 0.0)

    # ---- Linear(256 -> 128) ----
    h2 = jnp.dot(a1.astype(jnp.bfloat16), w2_ref[...],
                 preferred_element_type=jnp.float32) + b2_ref[...]
    cnt2 = float(rows * 128)
    mu2 = jnp.sum(h2) / cnt2
    var2 = jnp.maximum(jnp.sum(h2 * h2) / cnt2 - mu2 * mu2, 0.0)
    scale2 = bn_ref[2] * jax.lax.rsqrt(var2 + EPS)
    shift2 = bn_ref[3] - mu2 * scale2
    h2b = h2.astype(jnp.bfloat16).astype(jnp.float32)
    a2 = jnp.maximum(h2b * scale2 + shift2, 0.0)

    # ---- Linear(128 -> 10 padded to 128) + softmax ----
    logits = jnp.dot(a2.astype(jnp.bfloat16), w3_ref[...],
                     preferred_element_type=jnp.float32) + b3_ref[...]
    o_ref[...] = _masked_softmax(logits)


# --------------------------- wrapper ---------------------------

def _scale_shift_from_partials(partials, gamma, beta, count):
    """Fold per-tile (sum, sum-of-squares) partials into BN scale & shift."""
    total = jnp.sum(partials[:, 0, :])
    total_sq = jnp.sum(partials[:, 1, :])
    mu = total / count
    var = jnp.maximum(total_sq / count - mu * mu, 0.0)
    scale = gamma[0] * jax.lax.rsqrt(var + EPS)
    shift = beta[0] - mu * scale
    return jnp.stack([scale, shift]).astype(jnp.float32)   # (2,)


@functools.partial(jax.jit, static_argnames=("tile_m", "force_tiled"))
def mlp_bn_forward(x, params, *, tile_m=1024, force_tiled=False):
    """x: (N, 1, 784) float32 -> (N, 10) float32 (matches module output)."""
    w1, b1, g1, be1, w2, b2, g2, be2, w3p, b3p = params
    N = x.shape[0]
    x2d = x.reshape(N, 784)                    # keep f32; cast to bf16 in-kernel

    smem = pl.BlockSpec(memory_space=pltpu.MemorySpace.SMEM)
    vmem = pl.BlockSpec(memory_space=pltpu.MemorySpace.VMEM)

    # ---------- fused single-kernel path: small / medium batches ----------
    if (not force_tiled) and N <= FUSED_MAX_ROWS:
        bn_vec = jnp.concatenate([g1, be1, g2, be2]).astype(jnp.float32)  # (4,)
        probs_pad = pl.pallas_call(
            _fused_kernel,
            out_shape=jax.ShapeDtypeStruct((N, PAD_CLASSES), jnp.float32),
            in_specs=[smem, vmem, vmem, vmem, vmem, vmem, vmem, vmem],
            out_specs=vmem,
            compiler_params=pltpu.CompilerParams(
                vmem_limit_bytes=VMEM_LIMIT_BYTES),
        )(bn_vec, x2d, w1, b1, w2, b2, w3p, b3p)
        return probs_pad[:, :NUM_CLASSES]

    # ---------- tiled 3-call path: large batches ----------
    tm = max(16, min(_round_up(tile_m, 16), _round_up(N, 16)))
    half = _round_up((N + 1) // 2, 16)
    if tm > half:                 # ensure >= 2 grid steps (v7x megacore)
        tm = half
    n_pad = _round_up(N, tm)
    grid = (n_pad // tm,)

    if n_pad != N:
        x2d = jnp.pad(x2d, ((0, n_pad - N), (0, 0)))   # padded rows masked below

    cparams = pltpu.CompilerParams(dimension_semantics=("parallel",),
                                   vmem_limit_bytes=VMEM_LIMIT_BYTES)

    def resident(shape):          # constant index_map -> stays VMEM-resident
        return pl.BlockSpec(shape, lambda i: (0, 0))

    def rows(width):              # batch-tiled activation blocks
        return pl.BlockSpec((tm, width), lambda i: (i, 0))

    def stats(width):             # per-tile BN partials: (1, 2, width) blocks
        return pl.BlockSpec((1, 2, width), lambda i: (i, 0, 0))

    n_arr = jnp.array([N], jnp.int32)

    # ---- stage 1: Linear(784 -> 256) + BN1 partials ----
    h1, p1 = pl.pallas_call(
        _linear1_kernel,
        out_shape=(jax.ShapeDtypeStruct((n_pad, 256), jnp.bfloat16),
                   jax.ShapeDtypeStruct((grid[0], 2, 256), jnp.float32)),
        grid=grid,
        in_specs=[smem, rows(784), resident((784, 256)), resident((1, 256))],
        out_specs=[rows(256), stats(256)],
        compiler_params=cparams,
    )(n_arr, x2d, w1, b1)
    bn1 = _scale_shift_from_partials(p1, g1, be1, float(N) * 256.0)

    # ---- stage 2: BN1 + ReLU + Linear(256 -> 128) + BN2 partials ----
    h2, p2 = pl.pallas_call(
        _bn_relu_linear2_kernel,
        out_shape=(jax.ShapeDtypeStruct((n_pad, 128), jnp.bfloat16),
                   jax.ShapeDtypeStruct((grid[0], 2, 128), jnp.float32)),
        grid=grid,
        in_specs=[smem, smem, rows(256), resident((256, 128)), resident((1, 128))],
        out_specs=[rows(128), stats(128)],
        compiler_params=cparams,
    )(n_arr, bn1, h1, w2, b2)
    bn2 = _scale_shift_from_partials(p2, g2, be2, float(N) * 128.0)

    # ---- stage 3: BN2 + ReLU + Linear(128 -> 10 padded) + Softmax ----
    probs_pad = pl.pallas_call(
        _bn_relu_linear3_softmax_kernel,
        out_shape=jax.ShapeDtypeStruct((n_pad, PAD_CLASSES), jnp.float32),
        grid=grid,
        in_specs=[smem, rows(128),
                  resident((PAD_CLASSES, PAD_CLASSES)), resident((1, PAD_CLASSES))],
        out_specs=rows(PAD_CLASSES),
        compiler_params=cparams,
    )(bn2, h2, w3p, b3p)

    return probs_pad[:N, :NUM_CLASSES]


# --------------------------- params & reference ---------------------------

def init_params(key):
    """PyTorch-style uniform(-1/sqrt(in), 1/sqrt(in)) init; weights stored bf16,
    (in, out) layout; final layer padded to 128 lanes."""
    ks = jax.random.split(key, 6)

    def lin(kw, kb, fan_in, fan_out):
        bound = 1.0 / float(fan_in) ** 0.5
        w = jax.random.uniform(kw, (fan_in, fan_out), jnp.float32, -bound, bound)
        b = jax.random.uniform(kb, (1, fan_out), jnp.float32, -bound, bound)
        return w, b

    w1, b1 = lin(ks[0], ks[1], 784, 256)
    w2, b2 = lin(ks[2], ks[3], 256, 128)
    w3, b3 = lin(ks[4], ks[5], 128, NUM_CLASSES)
    w3p = jnp.zeros((PAD_CLASSES, PAD_CLASSES), jnp.float32).at[:, :NUM_CLASSES].set(w3)
    b3p = jnp.zeros((1, PAD_CLASSES), jnp.float32).at[:, :NUM_CLASSES].set(b3)
    # BatchNorm1d(1): weight=1, bias=0 (PyTorch defaults), single channel.
    g1 = jnp.ones((1,), jnp.float32); be1 = jnp.zeros((1,), jnp.float32)
    g2 = jnp.ones((1,), jnp.float32); be2 = jnp.zeros((1,), jnp.float32)
    # TODO(synk): BatchNorm running_mean/running_var buffer updates (training
    # side effect that does not affect this forward's output) are not produced.
    return (w1.astype(jnp.bfloat16), b1, g1, be1,
            w2.astype(jnp.bfloat16), b2, g2, be2,
            w3p.astype(jnp.bfloat16), b3p)


def reference_forward(x, params):
    """Pure-JAX mirror of the kernel math (bf16 matmul operands, f32 accum,
    bf16-stored intermediates, training-mode full-batch BatchNorm1d(1))."""
    w1, b1, g1, be1, w2, b2, g2, be2, w3p, b3p = params
    N = x.shape[0]

    def scale_shift(h, gamma, beta):
        mu = h.mean()
        var = jnp.maximum((h * h).mean() - mu * mu, 0.0)
        scale = gamma[0] * jax.lax.rsqrt(var + EPS)
        shift = beta[0] - mu * scale
        return scale, shift

    h1 = jnp.dot(x.reshape(N, 784).astype(jnp.bfloat16), w1,
                 preferred_element_type=jnp.float32) + b1
    s, t = scale_shift(h1, g1, be1)
    a1 = jnp.maximum(h1.astype(jnp.bfloat16).astype(jnp.float32) * s + t, 0.0)
    h2 = jnp.dot(a1.astype(jnp.bfloat16), w2,
                 preferred_element_type=jnp.float32) + b2
    s, t = scale_shift(h2, g2, be2)
    a2 = jnp.maximum(h2.astype(jnp.bfloat16).astype(jnp.float32) * s + t, 0.0)
    logits = jnp.dot(a2.astype(jnp.bfloat16), w3p[:, :NUM_CLASSES],
                     preferred_element_type=jnp.float32) + b3p[:, :NUM_CLASSES]
    return jax.nn.softmax(logits, axis=-1)


if __name__ == "__main__":
    key = jax.random.PRNGKey(0)
    k_x, k_p = jax.random.split(key)
    params = init_params(k_p)

    # Primary small test: PyTorch input layout (N, 1, 784), N = 8 -> fused path.
    N = 8
    x = jax.random.normal(k_x, (N, 1, 784), jnp.float32)
    out = jax.block_until_ready(mlp_bn_forward(x, params))
    ref = reference_forward(x, params)
    assert out.shape == (N, NUM_CLASSES)
    assert jnp.allclose(out, ref, atol=1e-3, rtol=1e-3), "mismatch vs JAX reference (fused)"
    assert jnp.allclose(out.sum(axis=-1), 1.0, atol=1e-3), "softmax rows must sum to 1"

    # Second test: tiled 3-call path with multi-step grid, row padding and
    # in-kernel BN partial sums.
    N2 = 50
    x2 = jax.random.normal(jax.random.PRNGKey(1), (N2, 1, 784), jnp.float32)
    out2 = jax.block_until_ready(
        mlp_bn_forward(x2, params, tile_m=16, force_tiled=True))
    ref2 = reference_forward(x2, params)
    assert out2.shape == (N2, NUM_CLASSES)
    assert jnp.allclose(out2, ref2, atol=1e-3, rtol=1e-3), "mismatch vs JAX reference (tiled)"
    assert jnp.allclose(out2.sum(axis=-1), 1.0, atol=1e-3), "softmax rows must sum to 1"

    print("KERNEL_OK")
</pallas_src>

<mosaic_0001>
module attributes {stable_mosaic.version = 11 : i64} {
  func.func @_fused_kernel(%arg0: memref<4xf32, #tpu.memory_space<smem>>, %arg1: memref<8x784xf32, #tpu.memory_space<vmem>>, %arg2: memref<784x256xbf16, #tpu.memory_space<vmem>>, %arg3: memref<1x256xf32, #tpu.memory_space<vmem>>, %arg4: memref<256x128xbf16, #tpu.memory_space<vmem>>, %arg5: memref<1x128xf32, #tpu.memory_space<vmem>>, %arg6: memref<128x128xbf16, #tpu.memory_space<vmem>>, %arg7: memref<1x128xf32, #tpu.memory_space<vmem>>, %arg8: memref<8x128xf32, #tpu.memory_space<vmem>>) attributes {dimension_semantics = [], scalar_prefetch = 0 : i64, scratch_operands = 0 : i64, tpu.core_type = #tpu.core_type<tc>} {
    %c0 = arith.constant 0 : index
    %c0_0 = arith.constant 0 : index
    %0 = vector.load %arg1[%c0, %c0_0] : memref<8x784xf32, #tpu.memory_space<vmem>>, vector<8x784xf32>
    %1 = arith.truncf %0 : vector<8x784xf32> to vector<8x784xbf16>
    %c0_1 = arith.constant 0 : index
    %c0_2 = arith.constant 0 : index
    %2 = vector.load %arg2[%c0_1, %c0_2] : memref<784x256xbf16, #tpu.memory_space<vmem>>, vector<784x256xbf16>
    %cst = arith.constant dense<0.000000e+00> : vector<8x256xf32>
    %3 = tpu.matmul %1, %2, %cst {dimension_numbers = #tpu.dot_dimension_numbers<[1], [0], [0], [1], [0, 0, 1, 1], [], []>} : vector<8x784xbf16>, vector<784x256xbf16>, vector<8x256xf32> -> vector<8x256xf32>
    %c0_3 = arith.constant 0 : index
    %c0_4 = arith.constant 0 : index
    %4 = vector.load %arg3[%c0_3, %c0_4] : memref<1x256xf32, #tpu.memory_space<vmem>>, vector<1x256xf32>
    %5 = vector.broadcast %4 : vector<1x256xf32> to vector<8x256xf32>
    %6 = arith.addf %3, %5 : vector<8x256xf32>
    %7 = vector.shape_cast %6 : vector<8x256xf32> to vector<1x8x256xf32>
    %cst_5 = arith.constant dense<0.000000e+00> : vector<1xf32>
    %8 = vector.multi_reduction <add>, %7, %cst_5 [1, 2] : vector<1x8x256xf32> to vector<1xf32>
    %9 = vector.shape_cast %8 : vector<1xf32> to vector<1x1x1xf32>
    %10 = vector.extract %9[0, 0, 0] : f32 from vector<1x1x1xf32>
    %cst_6 = arith.constant 2.048000e+03 : f32
    %11 = arith.divf %10, %cst_6 : f32
    %12 = arith.mulf %6, %6 : vector<8x256xf32>
    %13 = vector.shape_cast %12 : vector<8x256xf32> to vector<1x8x256xf32>
    %cst_7 = arith.constant dense<0.000000e+00> : vector<1xf32>
    %14 = vector.multi_reduction <add>, %13, %cst_7 [1, 2] : vector<1x8x256xf32> to vector<1xf32>
    %15 = vector.shape_cast %14 : vector<1xf32> to vector<1x1x1xf32>
    %16 = vector.extract %15[0, 0, 0] : f32 from vector<1x1x1xf32>
    %cst_8 = arith.constant 2.048000e+03 : f32
    %17 = arith.divf %16, %cst_8 : f32
    %18 = arith.mulf %11, %11 : f32
    %19 = arith.subf %17, %18 : f32
    %cst_9 = arith.constant 0.000000e+00 : f32
    %20 = arith.maximumf %19, %cst_9 : f32
    %c0_10 = arith.constant 0 : index
    %21 = memref.load %arg0[%c0_10] : memref<4xf32, #tpu.memory_space<smem>>
    %cst_11 = arith.constant 9.99999974E-6 : f32
    %22 = arith.addf %20, %cst_11 : f32
    %23 = math.rsqrt %22 : f32
    %24 = arith.mulf %21, %23 : f32
    %c1 = arith.constant 1 : index
    %25 = memref.load %arg0[%c1] : memref<4xf32, #tpu.memory_space<smem>>
    %26 = arith.mulf %11, %24 : f32
    %27 = arith.subf %25, %26 : f32
    %28 = arith.truncf %6 : vector<8x256xf32> to vector<8x256xbf16>
    %29 = arith.extf %28 : vector<8x256xbf16> to vector<8x256xf32>
    %30 = vector.broadcast %24 : f32 to vector<8x256xf32>
    %31 = arith.mulf %29, %30 : vector<8x256xf32>
    %32 = vector.broadcast %27 : f32 to vector<8x256xf32>
    %33 = arith.addf %31, %32 : vector<8x256xf32>
    %cst_12 = arith.constant 0.000000e+00 : f32
    %34 = vector.broadcast %cst_12 : f32 to vector<8x256xf32>
    %35 = arith.maximumf %33, %34 : vector<8x256xf32>
    %36 = arith.truncf %35 : vector<8x256xf32> to vector<8x256xbf16>
    %c0_13 = arith.constant 0 : index
    %c0_14 = arith.constant 0 : index
    %37 = vector.load %arg4[%c0_13, %c0_14] : memref<256x128xbf16, #tpu.memory_space<vmem>>, vector<256x128xbf16>
    %cst_15 = arith.constant dense<0.000000e+00> : vector<8x128xf32>
    %38 = tpu.matmul %36, %37, %cst_15 {dimension_numbers = #tpu.dot_dimension_numbers<[1], [0], [0], [1], [0, 0, 1, 1], [], []>} : vector<8x256xbf16>, vector<256x128xbf16>, vector<8x128xf32> -> vector<8x128xf32>
    %c0_16 = arith.constant 0 : index
    %c0_17 = arith.constant 0 : index
    %39 = vector.load %arg5[%c0_16, %c0_17] : memref<1x128xf32, #tpu.memory_space<vmem>>, vector<1x128xf32>
    %40 = vector.broadcast %39 : vector<1x128xf32> to vector<8x128xf32>
    %41 = arith.addf %38, %40 : vector<8x128xf32>
    %42 = vector.shape_cast %41 : vector<8x128xf32> to vector<1x8x128xf32>
    %cst_18 = arith.constant dense<0.000000e+00> : vector<1xf32>
    %43 = vector.multi_reduction <add>, %42, %cst_18 [1, 2] : vector<1x8x128xf32> to vector<1xf32>
    %44 = vector.shape_cast %43 : vector<1xf32> to vector<1x1x1xf32>
    %45 = vector.extract %44[0, 0, 0] : f32 from vector<1x1x1xf32>
    %cst_19 = arith.constant 1.024000e+03 : f32
    %46 = arith.divf %45, %cst_19 : f32
    %47 = arith.mulf %41, %41 : vector<8x128xf32>
    %48 = vector.shape_cast %47 : vector<8x128xf32> to vector<1x8x128xf32>
    %cst_20 = arith.constant dense<0.000000e+00> : vector<1xf32>
    %49 = vector.multi_reduction <add>, %48, %cst_20 [1, 2] : vector<1x8x128xf32> to vector<1xf32>
    %50 = vector.shape_cast %49 : vector<1xf32> to vector<1x1x1xf32>
    %51 = vector.extract %50[0, 0, 0] : f32 from vector<1x1x1xf32>
    %cst_21 = arith.constant 1.024000e+03 : f32
    %52 = arith.divf %51, %cst_21 : f32
    %53 = arith.mulf %46, %46 : f32
    %54 = arith.subf %52, %53 : f32
    %cst_22 = arith.constant 0.000000e+00 : f32
    %55 = arith.maximumf %54, %cst_22 : f32
    %c2 = arith.constant 2 : index
    %56 = memref.load %arg0[%c2] : memref<4xf32, #tpu.memory_space<smem>>
    %cst_23 = arith.constant 9.99999974E-6 : f32
    %57 = arith.addf %55, %cst_23 : f32
    %58 = math.rsqrt %57 : f32
    %59 = arith.mulf %56, %58 : f32
    %c3 = arith.constant 3 : index
    %60 = memref.load %arg0[%c3] : memref<4xf32, #tpu.memory_space<smem>>
    %61 = arith.mulf %46, %59 : f32
    %62 = arith.subf %60, %61 : f32
    %63 = arith.truncf %41 : vector<8x128xf32> to vector<8x128xbf16>
    %64 = arith.extf %63 : vector<8x128xbf16> to vector<8x128xf32>
    %65 = vector.broadcast %59 : f32 to vector<8x128xf32>
    %66 = arith.mulf %64, %65 : vector<8x128xf32>
    %67 = vector.broadcast %62 : f32 to vector<8x128xf32>
    %68 = arith.addf %66, %67 : vector<8x128xf32>
    %cst_24 = arith.constant 0.000000e+00 : f32
    %69 = vector.broadcast %cst_24 : f32 to vector<8x128xf32>
    %70 = arith.maximumf %68, %69 : vector<8x128xf32>
    %71 = arith.truncf %70 : vector<8x128xf32> to vector<8x128xbf16>
    %c0_25 = arith.constant 0 : index
    %c0_26 = arith.constant 0 : index
    %72 = vector.load %arg6[%c0_25, %c0_26] : memref<128x128xbf16, #tpu.memory_space<vmem>>, vector<128x128xbf16>
    %cst_27 = arith.constant dense<0.000000e+00> : vector<8x128xf32>
    %73 = tpu.matmul %71, %72, %cst_27 {dimension_numbers = #tpu.dot_dimension_numbers<[1], [0], [0], [1], [0, 0, 1, 1], [], []>} : vector<8x128xbf16>, vector<128x128xbf16>, vector<8x128xf32> -> vector<8x128xf32>
    %c0_28 = arith.constant 0 : index
    %c0_29 = arith.constant 0 : index
    %74 = vector.load %arg7[%c0_28, %c0_29] : memref<1x128xf32, #tpu.memory_space<vmem>>, vector<1x128xf32>
    %75 = vector.broadcast %74 : vector<1x128xf32> to vector<8x128xf32>
    %76 = arith.addf %73, %75 : vector<8x128xf32>
    %77 = tpu.iota {dimensions = array<i32: 1>} : vector<8x128xi32>
    %c10_i32 = arith.constant 10 : i32
    %78 = vector.broadcast %c10_i32 : i32 to vector<8x128xi32>
    %79 = arith.cmpi slt, %77, %78 : vector<8x128xi32>
    %cst_30 = arith.constant -1.000000e+30 : f32
    %80 = vector.broadcast %cst_30 : f32 to vector<8x128xf32>
    %81 = arith.select %79, %76, %80 : vector<8x128xi1>, vector<8x128xf32>
    %cst_31 = arith.constant dense<0xFF800000> : vector<8xf32>
    %82 = vector.multi_reduction <maximumf>, %81, %cst_31 [1] : vector<8x128xf32> to vector<8xf32>
    %83 = vector.shape_cast %82 : vector<8xf32> to vector<8x1xf32>
    %84 = vector.broadcast %83 : vector<8x1xf32> to vector<8x128xf32>
    %85 = arith.subf %81, %84 : vector<8x128xf32>
    %86 = math.exp %85 : vector<8x128xf32>
    %cst_32 = arith.constant dense<0.000000e+00> : vector<8xf32>
    %87 = vector.multi_reduction <add>, %86, %cst_32 [1] : vector<8x128xf32> to vector<8xf32>
    %88 = vector.shape_cast %87 : vector<8xf32> to vector<8x1xf32>
    %89 = tpu.reciprocal %88 {approx = true} : vector<8x1xf32> -> vector<8x1xf32>
    %90 = arith.mulf %88, %89 : vector<8x1xf32>
    %cst_33 = arith.constant 2.000000e+00 : f32
    %91 = vector.broadcast %cst_33 : f32 to vector<8x1xf32>
    %92 = arith.subf %91, %90 : vector<8x1xf32>
    %93 = arith.mulf %89, %92 : vector<8x1xf32>
    %94 = vector.broadcast %93 : vector<8x1xf32> to vector<8x128xf32>
    %95 = arith.mulf %86, %94 : vector<8x128xf32>
    %c0_34 = arith.constant 0 : index
    %c0_35 = arith.constant 0 : index
    %96 = vector.load %arg8[%c0_34, %c0_35] : memref<8x128xf32, #tpu.memory_space<vmem>>, vector<8x128xf32>
    tpu.vector_store %arg8[%c0_34, %c0_35], %95 {strides = array<i32>} : memref<8x128xf32, #tpu.memory_space<vmem>>, vector<8x128xf32>,
    return
  }
}

</mosaic_0001>

<bundles_post_ra>
// kernel: mlp_bn_forward.1
= control target key start
LH: loop header
LB: loop body
LE: loop exit
PB: predicated region body
PF: predicated region fallthrough
CT: control target
= control target key end

     0   :  { %13 = vsyncpa [#allocation5], 0  ;;  %s2208_s0 = inlined_call_operand.vmem [shape: f32[4], index: 0, kind: input, shape index: {}]   ;;  %s2209_s1 = inlined_call_operand.vmem [shape: f32[8,784], index: 1, kind: input, shape index: {}]   ;;  %s2210_s2 = inlined_call_operand.hbm [shape: bf16[784,256], index: 2, kind: input, shape index: {}]   ;;  %s2211_s3 = inlined_call_operand.vmem [shape: f32[1,256], index: 3, kind: input, shape index: {}]   ;;  %s2212_s4 = inlined_call_operand.hbm [shape: bf16[256,128], index: 4, kind: input, shape index: {}]   ;;  %s2213_s5 = inlined_call_operand.vmem [shape: f32[1,128], index: 5, kind: input, shape index: {}]   ;;  %s2214_s6 = inlined_call_operand.vmem [shape: bf16[128,128], index: 6, kind: input, shape index: {}]   ;;  %s2215_s7 = inlined_call_operand.vmem [shape: f32[1,128], index: 7, kind: input, shape index: {}]   ;;  %s2216_s8 = inlined_call_operand.hbm [shape: f32[8,128], index: 8, kind: output, shape index: {}]  }
   0x1   :  { %14 = vsyncpa [#allocation3], 0 }
   0x2   :  { %15 = vsyncpa [#allocation8], 0 }
   0x3   :  { %16 = vsyncpa [#allocation4], 0  ;;  %s22_s29 = sshll.u32 %s2208_s0, 4  ;;  %s32_s10 = sshll.u32 %s2210_s2, 4  ;;  %s23_s29 = int_to_ptr.vmem [resolvable:$true] %s22_s29  ;;  %s33_s10 = int_to_ptr.hbm [resolvable:$true] %s32_s10 }
   0x4   :  { %s2033_s11 = smov [#allocation2]   ;;  %s2034_s12 = smov [#allocation6]  }
   0x5   :  { %25 = dma.vmem_to_smem %s23_s29, 16, %s2033_s11, [#allocation5]  }
   0x6   :  { %s34_s13 = sshll.u32 %s2034_s12, 4  ;;  %s2035_s14 = smov 128   ;;  %s35_s13 = int_to_ptr.vmem [resolvable:$true] %s34_s13 }
   0x7   :  { %s2036_s15 = smov 8   ;;  %s47_s18 = sshll.u32 %s2212_s4, 4  ;;  %s48_s18 = int_to_ptr.hbm [resolvable:$true] %s47_s18 }
   0x8   :  { %40 = dma.hbm_to_vmem [thread:$0]  %s33_s10, 12544, %s35_s13, [#allocation3], %s2035_s14, %s2035_s14, %s2036_s15  }
   0x9   :  { %s2037_s0 = smov [#allocation7]   ;;  %s2038_s20 = smov 64  }
   0xa   :  { %s49_s19 = sshll.u32 %s2037_s0, 4  ;;  %s2039_s21 = smov 4   ;;  %s50_s19 = int_to_ptr.vmem [resolvable:$true] %s49_s19 }
   0xb   :  { %55 = dma.hbm_to_vmem [thread:$0]  %s48_s18, 2048, %s50_s19, [#allocation8], %s2038_s20, %s2038_s20, %s2039_s21  }
   0xc   :  { %2025 = dma.done.wait [#allocation5], 16  }
   0xd   :  { %2026 = vsyncadd [#allocation5], 4294967280 }
   0xe   :  { %2027 = dma.done.wait [#allocation3], 12544  }
   0xf   :  { %2028 = vsyncadd [#allocation3], 4294954752 }
  0x10   :  { %2029 = dma.done.wait [#allocation8], 2048  }
  0x11   :  { %2030 = vsyncadd [#allocation8], 4294965248 }
  0x12   :  { %74 = sfence }
  0x13   :  { %v1343_v0 = vld [vmem:[#allocation6 + $0x70] sm:$0xf]  ;;  %v1793_v1 = vld [vmem:[#allocation6 + $0x74] sm:$0xf0]  ;;  %v1335_v11 = vld [vmem:[#allocation6 + $0x60] sm:$0xf] }
  0x14   :  { %v1471_v2 = vld [vmem:[#allocation6 + $0x170] sm:$0xf]  ;;  %v1344_v3 = vor.u32 %v1793_v1, %v1343_v0  ;;  %v1825_v4 = vld [vmem:[#allocation6 + $0x174] sm:$0xf0]  ;;  %v1791_v13 = vld [vmem:[#allocation6 + $0x64] sm:$0xf0] }
  0x15   :  { %v1535_v5 = vld [vmem:[#allocation6 + $0x1f0] sm:$0xf]  ;;  %v1841_v6 = vld [vmem:[#allocation6 + $0x1f4] sm:$0xf0]  ;;  %v1472_v7 = vor.u32 %v1825_v4, %v1471_v2  ;;  %v1463_v14 = vld [vmem:[#allocation6 + $0x160] sm:$0xf]  ;;  %v1336_v16 = vor.u32 %v1791_v13, %v1335_v11 }
  0x16   :  { %v1536_v8 = vor.u32 %v1841_v6, %v1535_v5  ;;  %v1407_v9 = vld [vmem:[#allocation6 + $0xf0] sm:$0xf]  ;;  %v1809_v10 = vld [vmem:[#allocation6 + $0xf4] sm:$0xf0]  ;;  %688 = vmatpush.bf16.msra.mxu0 %v1344_v3  ;;  %v1823_v15 = vld [vmem:[#allocation6 + $0x164] sm:$0xf0] }
  0x17   :  { %v1408_v12 = vor.u32 %v1809_v10, %v1407_v9  ;;  %714 = vmatpush.bf16.msra.mxu2 %v1472_v7  ;;  %v1464_v17 = vor.u32 %v1823_v15, %v1463_v14  ;;  %v1527_v18 = vld [vmem:[#allocation6 + $0x1e0] sm:$0xf]  ;;  %v1839_v19 = vld [vmem:[#allocation6 + $0x1e4] sm:$0xf0]  ;;  %v1327_v23 = vld [vmem:[#allocation6 + $0x50] sm:$0xf] }
  0x18   :  { %727 = vmatpush.bf16.msra.mxu3 %v1536_v8  ;;  %v1399_v20 = vld [vmem:[#allocation6 + $0xe0] sm:$0xf]  ;;  %v1528_v21 = vor.u32 %v1839_v19, %v1527_v18  ;;  %v1807_v22 = vld [vmem:[#allocation6 + $0xe4] sm:$0xf0]  ;;  %v1789_v24 = vld [vmem:[#allocation6 + $0x54] sm:$0xf0] }
  0x19   :  { %701 = vmatpush.bf16.msra.mxu1 %v1408_v12  ;;  %v1400_v25 = vor.u32 %v1807_v22, %v1399_v20  ;;  %v1455_v26 = vld [vmem:[#allocation6 + $0x150] sm:$0xf]  ;;  %v1821_v27 = vld [vmem:[#allocation6 + $0x154] sm:$0xf0]  ;;  %v1328_v29 = vor.u32 %v1789_v24, %v1327_v23  ;;  %v1319_v35 = vld [vmem:[#allocation6 + $0x40] sm:$0xf] }
  0x1a   :  { %v1519_v28 = vld [vmem:[#allocation6 + $0x1d0] sm:$0xf]  ;;  %689 = vmatpush.bf16.msra.mxu0 %v1336_v16  ;;  %v1837_v30 = vld [vmem:[#allocation6 + $0x1d4] sm:$0xf0]  ;;  %v1456_v33 = vor.u32 %v1821_v27, %v1455_v26  ;;  %v1787_v36 = vld [vmem:[#allocation6 + $0x44] sm:$0xf0] }
  0x1b   :  { %v1391_v31 = vld [vmem:[#allocation6 + $0xd0] sm:$0xf]  ;;  %v1805_v32 = vld [vmem:[#allocation6 + $0xd4] sm:$0xf0]  ;;  %715 = vmatpush.bf16.msra.mxu2 %v1464_v17  ;;  %v1520_v34 = vor.u32 %v1837_v30, %v1519_v28  ;;  %v1447_v37 = vld [vmem:[#allocation6 + $0x140] sm:$0xf]  ;;  %v1320_v44 = vor.u32 %v1787_v36, %v1319_v35 }
  0x1c   :  { %728 = vmatpush.bf16.msra.mxu3 %v1528_v21  ;;  %v1392_v38 = vor.u32 %v1805_v32, %v1391_v31  ;;  %v1819_v39 = vld [vmem:[#allocation6 + $0x144] sm:$0xf0]  ;;  %v1511_v40 = vld [vmem:[#allocation6 + $0x1c0] sm:$0xf]  ;;  %v1311_v47 = vld [vmem:[#allocation6 + $0x30] sm:$0xf] }
  0x1d   :  { %702 = vmatpush.bf16.msra.mxu1 %v1400_v25  ;;  %v1835_v41 = vld [vmem:[#allocation6 + $0x1c4] sm:$0xf0]  ;;  %v1383_v42 = vld [vmem:[#allocation6 + $0xc0] sm:$0xf]  ;;  %v1448_v45 = vor.u32 %v1819_v39, %v1447_v37  ;;  %v1785_v48 = vld [vmem:[#allocation6 + $0x34] sm:$0xf0] }
  0x1e   :  { %v1803_v43 = vld [vmem:[#allocation6 + $0xc4] sm:$0xf0]  ;;  %690 = vmatpush.bf16.msra.mxu0 %v1328_v29  ;;  %v1512_v46 = vor.u32 %v1835_v41, %v1511_v40  ;;  %v1439_v49 = vld [vmem:[#allocation6 + $0x130] sm:$0xf]  ;;  %v1817_v51 = vld [vmem:[#allocation6 + $0x134] sm:$0xf0]  ;;  %v1312_v56 = vor.u32 %v1785_v48, %v1311_v47 }
  0x1f   :  { %716 = vmatpush.bf16.msra.mxu2 %v1456_v33  ;;  %v1384_v50 = vor.u32 %v1803_v43, %v1383_v42  ;;  %v1503_v52 = vld [vmem:[#allocation6 + $0x1b0] sm:$0xf]  ;;  %v1833_v53 = vld [vmem:[#allocation6 + $0x1b4] sm:$0xf0]  ;;  %v1440_v57 = vor.u32 %v1817_v51, %v1439_v49  ;;  %v1303_v59 = vld [vmem:[#allocation6 + $0x20] sm:$0xf] }
  0x20   :  { %729 = vmatpush.bf16.msra.mxu3 %v1520_v34  ;;  %v1375_v54 = vld [vmem:[#allocation6 + $0xb0] sm:$0xf]  ;;  %v1801_v55 = vld [vmem:[#allocation6 + $0xb4] sm:$0xf0]  ;;  %v1504_v58 = vor.u32 %v1833_v53, %v1503_v52  ;;  %v1783_v60 = vld [vmem:[#allocation6 + $0x24] sm:$0xf0] }
  0x21   :  { %703 = vmatpush.bf16.msra.mxu1 %v1392_v38  ;;  %v1431_v61 = vld [vmem:[#allocation6 + $0x120] sm:$0xf]  ;;  %v1376_v62 = vor.u32 %v1801_v55, %v1375_v54  ;;  %v1815_v63 = vld [vmem:[#allocation6 + $0x124] sm:$0xf0]  ;;  %v1304_v4 = vor.u32 %v1783_v60, %v1303_v59  ;;  %v1295_v7 = vld [vmem:[#allocation6 + $0x10] sm:$0xf] }
  0x22   :  { %691 = vmatpush.bf16.msra.mxu0 %v1320_v44  ;;  %v1495_v0 = vld [vmem:[#allocation6 + $0x1a0] sm:$0xf]  ;;  %v1831_v1 = vld [vmem:[#allocation6 + $0x1a4] sm:$0xf0]  ;;  %v1432_v5 = vor.u32 %v1815_v63, %v1431_v61  ;;  %v1781_v8 = vld [vmem:[#allocation6 + $0x14] sm:$0xf0] }
  0x23   :  { %717 = vmatpush.bf16.msra.mxu2 %v1448_v45  ;;  %v1367_v2 = vld [vmem:[#allocation6 + $0xa0] sm:$0xf]  ;;  %v1799_v3 = vld [vmem:[#allocation6 + $0xa4] sm:$0xf0]  ;;  %v1496_v6 = vor.u32 %v1831_v1, %v1495_v0  ;;  %v1423_v9 = vld [vmem:[#allocation6 + $0x110] sm:$0xf]  ;;  %v1296_v16 = vor.u32 %v1781_v8, %v1295_v7 }
  0x24   :  { %730 = vmatpush.bf16.msra.mxu3 %v1512_v46  ;;  %v1368_v10 = vor.u32 %v1799_v3, %v1367_v2  ;;  %v1813_v11 = vld [vmem:[#allocation6 + $0x114] sm:$0xf0]  ;;  %v1487_v12 = vld [vmem:[#allocation6 + $0x190] sm:$0xf]  ;;  %v1287_v17 = vld [vmem:[#allocation6] sm:$0xf] }
  0x25   :  { %704 = vmatpush.bf16.msra.mxu1 %v1384_v50  ;;  %v1829_v13 = vld [vmem:[#allocation6 + $0x194] sm:$0xf0]  ;;  %v1359_v14 = vld [vmem:[#allocation6 + $0x90] sm:$0xf]  ;;  %v1779_v18 = vld [vmem:[#allocation6 + $0x4] sm:$0xf0]  ;;  %v1424_v20 = vor.u32 %v1813_v11, %v1423_v9 }
  0x26   :  { %692 = vmatpush.bf16.msra.mxu0 %v1312_v56  ;;  %v1797_v15 = vld [vmem:[#allocation6 + $0x94] sm:$0xf0]  ;;  %v1415_v19 = vld [vmem:[#allocation6 + $0x100] sm:$0xf]  ;;  %v1488_v21 = vor.u32 %v1829_v13, %v1487_v12  ;;  %v1811_v22 = vld [vmem:[#allocation6 + $0x104] sm:$0xf0]  ;;  %v1288_v32 = vor.u32 %v1779_v18, %v1287_v17 }
  0x27   :  { %718 = vmatpush.bf16.msra.mxu2 %v1440_v57  ;;  %v1479_v23 = vld [vmem:[#allocation6 + $0x180] sm:$0xf]  ;;  %v1827_v24 = vld [vmem:[#allocation6 + $0x184] sm:$0xf0]  ;;  %v1360_v25 = vor.u32 %v1797_v15, %v1359_v14  ;;  %v1599_v26 = vld [vmem:[#allocation6 + $0x270] sm:$0xf]  ;;  %v1416_v36 = vor.u32 %v1811_v22, %v1415_v19 }
  0x28   :  { %731 = vmatpush.bf16.msra.mxu3 %v1504_v58  ;;  %v1857_v27 = vld [vmem:[#allocation6 + $0x274] sm:$0xf0]  ;;  %v1792_v28 = vld [vmem:[#allocation6 + $0x74] sm:$0xf]  ;;  %v1345_v29 = vld [vmem:[#allocation6 + $0x78] sm:$0xf0]  ;;  %v1480_v37 = vor.u32 %v1827_v24, %v1479_v23 }
  0x29   :  { %705 = vmatpush.bf16.msra.mxu1 %v1376_v62  ;;  %v1351_v30 = vld [vmem:[#allocation6 + $0x80] sm:$0xf]  ;;  %v1795_v31 = vld [vmem:[#allocation6 + $0x84] sm:$0xf0]  ;;  %v78_v33 = vld [vmem:[%s2209_s1 + $0x10] sm:$0xff]  ;;  %v1600_v41 = vor.u32 %v1857_v27, %v1599_v26  ;;  %v1348_v42 = vor.u32 %v1792_v28, %v1345_v29  ;;  %vm684_vm0 = vcmask 130048  }
  0x2a   :  { %693 = vmatpush.bf16.msra.mxu0 %v1304_v4  ;;  %v1671_v34 = vld [vmem:[#allocation6 + $0x300] sm:$0xf]  ;;  %v1875_v35 = vld [vmem:[#allocation6 + $0x304] sm:$0xf0]  ;;  %v1663_v38 = vld [vmem:[#allocation6 + $0x2f0] sm:$0xf]  ;;  %v1352_v46 = vor.u32 %v1795_v31, %v1351_v30  ;;  %v2104_v51 = vpack.c.bf16 %v78_v33, %v78_v33 }
  0x2b   :  { %719 = vmatpush.bf16.msra.mxu2 %v1432_v5  ;;  %v1873_v39 = vld [vmem:[#allocation6 + $0x2f4] sm:$0xf0]  ;;  %v1808_v40 = vld [vmem:[#allocation6 + $0xf4] sm:$0xf]  ;;  %v1409_v43 = vld [vmem:[#allocation6 + $0xf8] sm:$0xf0]  ;;  %v1672_v47 = vor.u32 %v1875_v35, %v1671_v34 }
  0x2c   :  { %732 = vmatpush.bf16.msra.mxu3 %v1496_v6  ;;  %v1591_v44 = vld [vmem:[#allocation6 + $0x260] sm:$0xf]  ;;  %v1855_v48 = vld [vmem:[#allocation6 + $0x264] sm:$0xf0]  ;;  %v1790_v49 = vld [vmem:[#allocation6 + $0x64] sm:$0xf]  ;;  %v1664_v52 = vor.u32 %v1873_v39, %v1663_v38  ;;  %v1412_v55 = vor.u32 %v1808_v40, %v1409_v43 }
  0x2d   :  { %706 = vmatpush.bf16.msra.mxu1 %v1368_v10  ;;  %v76_v45 = vld [vmem:[%s2209_s1] sm:$0xff]  ;;  %v1337_v50 = vld [vmem:[#allocation6 + $0x68] sm:$0xf0]  ;;  %v79_v53 = vld [vmem:[%s2209_s1 + $0x18] sm:$0xff]  ;;  %v1592_v59 = vor.u32 %v1855_v48, %v1591_v44  ;;  %s2041_s0 = smov 0.0   ;;  %s913_s21 = sld [smem:[#allocation2]] }
  0x2e   :  { %694 = vmatpush.bf16.msra.mxu0 %v1296_v16  ;;  %v77_v54 = vld [vmem:[%s2209_s1 + $0x8] sm:$0xff]  ;;  %v2112_v56 = vpack.c.bf16 %v76_v45, %v76_v45  ;;  %v1655_v57 = vld [vmem:[#allocation6 + $0x2e0] sm:$0xf]  ;;  %v1340_v60 = vor.u32 %v1790_v49, %v1337_v50  ;;  %v1806_v61 = vld [vmem:[#allocation6 + $0xe4] sm:$0xf]  ;;  %v2114_v0 = vpack.c.bf16 %v79_v53, %v79_v53  ;;  %s1679_s2 = sld [smem:[#allocation2 + $0x1]] }
  0x2f   :  { %720 = vmatpush.bf16.msra.mxu2 %v1424_v20  ;;  %v1871_v58 = vld [vmem:[#allocation6 + $0x2e4] sm:$0xf0]  ;;  %v1401_v62 = vld [vmem:[#allocation6 + $0xe8] sm:$0xf0]  ;;  %v1583_v63 = vld [vmem:[#allocation6 + $0x250] sm:$0xf]  ;;  %v2116_v1 = vpack.c.bf16 %v77_v54, %v77_v54 }
  0x30   :  { %733 = vmatpush.bf16.msra.mxu3 %v1488_v21  ;;  %v1853_v2 = vld [vmem:[#allocation6 + $0x254] sm:$0xf0]  ;;  %v1788_v3 = vld [vmem:[#allocation6 + $0x54] sm:$0xf]  ;;  %v1329_v4 = vld [vmem:[#allocation6 + $0x58] sm:$0xf0]  ;;  %v1656_v5 = vor.u32 %v1871_v58, %v1655_v57  ;;  %v1404_v6 = vor.u32 %v1806_v61, %v1401_v62 }
  0x31   :  { %707 = vmatpush.bf16.msra.mxu1 %v1360_v25  ;;  %v1647_v7 = vld [vmem:[#allocation6 + $0x2d0] sm:$0xf]  ;;  %v1869_v8 = vld [vmem:[#allocation6 + $0x2d4] sm:$0xf0]  ;;  %v1584_v9 = vor.u32 %v1853_v2, %v1583_v63  ;;  %v1332_v10 = vor.u32 %v1788_v3, %v1329_v4  ;;  %v1804_v11 = vld [vmem:[#allocation6 + $0xd4] sm:$0xf] }
  0x32   :  { %695 = vmatpush.bf16.msra.mxu0 %v1288_v32  ;;  %v1393_v12 = vld [vmem:[#allocation6 + $0xd8] sm:$0xf0]  ;;  %v1575_v13 = vld [vmem:[#allocation6 + $0x240] sm:$0xf]  ;;  %v1851_v14 = vld [vmem:[#allocation6 + $0x244] sm:$0xf0]  ;;  %v1648_v17 = vor.u32 %v1869_v8, %v1647_v7 }
  0x33   :  { %721 = vmatpush.bf16.msra.mxu2 %v1416_v36  ;;  %v1786_v15 = vld [vmem:[#allocation6 + $0x44] sm:$0xf]  ;;  %v1321_v16 = vld [vmem:[#allocation6 + $0x48] sm:$0xf0]  ;;  %v1396_v18 = vor.u32 %v1804_v11, %v1393_v12  ;;  %v1639_v19 = vld [vmem:[#allocation6 + $0x2c0] sm:$0xf]  ;;  %v1576_v21 = vor.u32 %v1851_v14, %v1575_v13 }
  0x34   :  { %734 = vmatpush.bf16.msra.mxu3 %v1480_v37  ;;  %v1867_v20 = vld [vmem:[#allocation6 + $0x2c4] sm:$0xf0]  ;;  %v1324_v22 = vor.u32 %v1786_v15, %v1321_v16  ;;  %v1802_v23 = vld [vmem:[#allocation6 + $0xc4] sm:$0xf]  ;;  %v1385_v24 = vld [vmem:[#allocation6 + $0xc8] sm:$0xf0] }
  0x35   :  { %708 = vmatpush.bf16.msra.mxu1 %v1352_v46  ;;  %696 = vmatmul.bf16.vlgmr.msra.gmra.mxu0 %v2112_v56  ;;  %v1567_v25 = vld [vmem:[#allocation6 + $0x230] sm:$0xf]  ;;  %v1849_v26 = vld [vmem:[#allocation6 + $0x234] sm:$0xf0]  ;;  %v1784_v27 = vld [vmem:[#allocation6 + $0x34] sm:$0xf]  ;;  %v1640_v29 = vor.u32 %v1867_v20, %v1639_v19  ;;  %v1388_v30 = vor.u32 %v1802_v23, %v1385_v24 }
  0x36   :  { %740 = vmatpush.bf16.msrb.mxu0 %v1600_v41  ;;  %722 = vmatmul.bf16.vlgmr.msra.gmra.mxu2 %v2104_v51  ;;  %v1313_v28 = vld [vmem:[#allocation6 + $0x38] sm:$0xf0]  ;;  %v1631_v31 = vld [vmem:[#allocation6 + $0x2b0] sm:$0xf]  ;;  %v1865_v32 = vld [vmem:[#allocation6 + $0x2b4] sm:$0xf0]  ;;  %v1568_v34 = vor.u32 %v1849_v26, %v1567_v25 }
  0x37   :  { %773 = vmatpush.bf16.msrb.mxu2 %v1672_v47  ;;  %735 = vmatmul.bf16.vlgmr.msra.gmra.mxu3 %v2114_v0  ;;  %v82_v33 = vld [vmem:[%s2209_s1 + $0x30] sm:$0xff]  ;;  %v1316_v35 = vor.u32 %v1784_v27, %v1313_v28  ;;  %v1377_v37 = vld [vmem:[#allocation6 + $0xb8] sm:$0xf0]  ;;  %v1559_v38 = vld [vmem:[#allocation6 + $0x220] sm:$0xf]  ;;  %s1745_s25 = sld [smem:[#allocation2 + $0x3]] }
  0x38   :  { %779 = vmatpush.bf16.msrb.mxu3 %v1348_v42  ;;  %709 = vmatmul.bf16.vlgmr.msra.gmra.mxu1 %v2116_v1  ;;  %v1800_v36 = vld [vmem:[#allocation6 + $0xb4] sm:$0xf]  ;;  %v1847_v39 = vld [vmem:[#allocation6 + $0x224] sm:$0xf0]  ;;  %v1782_v40 = vld [vmem:[#allocation6 + $0x24] sm:$0xf]  ;;  %v1632_v42 = vor.u32 %v1865_v32, %v1631_v31  ;;  %v2125_v43 = vpack.c.bf16 %v82_v33, %v82_v33 }
  0x39   :  { %753 = vmatpush.bf16.msrb.mxu1 %v1664_v52  ;;  %v1305_v41 = vld [vmem:[#allocation6 + $0x28] sm:$0xf0]  ;;  %v1380_v44 = vor.u32 %v1800_v36, %v1377_v37  ;;  %v1623_v45 = vld [vmem:[#allocation6 + $0x2a0] sm:$0xf]  ;;  %v1863_v46 = vld [vmem:[#allocation6 + $0x2a4] sm:$0xf0]  ;;  %v1560_v47 = vor.u32 %v1847_v39, %v1559_v38 }
  0x3a   :  { %741 = vmatpush.bf16.msrb.mxu0 %v1592_v59  ;;  %v1308_v48 = vor.u32 %v1782_v40, %v1305_v41  ;;  %v1798_v49 = vld [vmem:[#allocation6 + $0xa4] sm:$0xf]  ;;  %v1369_v50 = vld [vmem:[#allocation6 + $0xa8] sm:$0xf0]  ;;  %v1551_v52 = vld [vmem:[#allocation6 + $0x210] sm:$0xf]  ;;  %v1624_v57 = vor.u32 %v1863_v46, %v1623_v45 }
  0x3b   :  { %792 = vmatpush.bf16.msra.mxu2 %v1412_v55  ;;  %v1845_v53 = vld [vmem:[#allocation6 + $0x214] sm:$0xf0]  ;;  %v1780_v54 = vld [vmem:[#allocation6 + $0x14] sm:$0xf]  ;;  %v1297_v55 = vld [vmem:[#allocation6 + $0x18] sm:$0xf0]  ;;  %v1372_v58 = vor.u32 %v1798_v49, %v1369_v50 }
  0x3c   :  { %780 = vmatpush.bf16.msrb.mxu3 %v1340_v60  ;;  %v1615_v59 = vld [vmem:[#allocation6 + $0x290] sm:$0xf]  ;;  %v1861_v60 = vld [vmem:[#allocation6 + $0x294] sm:$0xf0]  ;;  %v1796_v61 = vld [vmem:[#allocation6 + $0x94] sm:$0xf]  ;;  %v1552_v62 = vor.u32 %v1845_v53, %v1551_v52  ;;  %v1300_v63 = vor.u32 %v1780_v54, %v1297_v55 }
  0x3d   :  { %754 = vmatpush.bf16.msrb.mxu1 %v1656_v5  ;;  %v1361_v2 = vld [vmem:[#allocation6 + $0x98] sm:$0xf0]  ;;  %v1543_v3 = vld [vmem:[#allocation6 + $0x200] sm:$0xf]  ;;  %v1843_v4 = vld [vmem:[#allocation6 + $0x204] sm:$0xf0]  ;;  %v1616_v8 = vor.u32 %v1861_v60, %v1615_v59 }
  0x3e   :  { %742 = vmatpush.bf16.msrb.mxu0 %v1584_v9  ;;  %v1778_v5 = vld [vmem:[#allocation6 + $0x4] sm:$0xf]  ;;  %v1824_v7 = vld [vmem:[#allocation6 + $0x174] sm:$0xf]  ;;  %v1473_v9 = vld [vmem:[#allocation6 + $0x178] sm:$0xf0]  ;;  %v1364_v12 = vor.u32 %v1796_v61, %v1361_v2  ;;  %v1544_v16 = vor.u32 %v1843_v4, %v1543_v3 }
  0x3f   :  { %793 = vmatpush.bf16.msra.mxu2 %v1404_v6  ;;  %v1289_v6 = vld [vmem:[#allocation6 + $0x8] sm:$0xf0]  ;;  %v1601_v11 = vld [vmem:[#allocation6 + $0x278] sm:$0xf0]  ;;  %v1607_v13 = vld [vmem:[#allocation6 + $0x280] sm:$0xf] }
  0x40   :  { %781 = vmatpush.bf16.msrb.mxu3 %v1332_v10  ;;  %v1856_v10 = vld [vmem:[#allocation6 + $0x274] sm:$0xf]  ;;  %v1859_v14 = vld [vmem:[#allocation6 + $0x284] sm:$0xf0]  ;;  %v80_v15 = vld [vmem:[%s2209_s1 + $0x20] sm:$0xff] }
  0x41   :  { %755 = vmatpush.bf16.msrb.mxu1 %v1648_v17  ;;  %v1292_v17 = vor.u32 %v1778_v5, %v1289_v6  ;;  %v1353_v19 = vld [vmem:[#allocation6 + $0x88] sm:$0xf0]  ;;  %v1840_v20 = vld [vmem:[#allocation6 + $0x1f4] sm:$0xf]  ;;  %v1537_v23 = vld [vmem:[#allocation6 + $0x1f8] sm:$0xf0]  ;;  %v1608_v26 = vor.u32 %v1859_v14, %v1607_v13 }
  0x42   :  { %743 = vmatpush.bf16.msrb.mxu0 %v1576_v21  ;;  %v1476_v21 = vor.u32 %v1824_v7, %v1473_v9  ;;  %v1872_v24 = vld [vmem:[#allocation6 + $0x2f4] sm:$0xf]  ;;  %v1665_v25 = vld [vmem:[#allocation6 + $0x2f8] sm:$0xf0]  ;;  %v81_v27 = vld [vmem:[%s2209_s1 + $0x28] sm:$0xff] }
  0x43   :  { %794 = vmatpush.bf16.msra.mxu2 %v1396_v18  ;;  %v1794_v18 = vld [vmem:[#allocation6 + $0x84] sm:$0xf]  ;;  %v1593_v33 = vld [vmem:[#allocation6 + $0x268] sm:$0xf0]  ;;  %v2137_v37 = vpack.c.bf16 %v81_v27, %v81_v27  ;;  %v1457_v45 = vld [vmem:[#allocation6 + $0x158] sm:$0xf0] }
  0x44   :  { %782 = vmatpush.bf16.msrb.mxu3 %v1324_v22  ;;  %v1604_v22 = vor.u32 %v1856_v10, %v1601_v11  ;;  %v1822_v28 = vld [vmem:[#allocation6 + $0x164] sm:$0xf]  ;;  %v1356_v31 = vor.u32 %v1794_v18, %v1353_v19  ;;  %v1529_v39 = vld [vmem:[#allocation6 + $0x1e8] sm:$0xf0]  ;;  %v1852_v46 = vld [vmem:[#allocation6 + $0x254] sm:$0xf] }
  0x45   :  { %756 = vmatpush.bf16.msrb.mxu1 %v1640_v29  ;;  %v1465_v29 = vld [vmem:[#allocation6 + $0x168] sm:$0xf0]  ;;  %v1854_v32 = vld [vmem:[#allocation6 + $0x264] sm:$0xf]  ;;  %v1836_v50 = vld [vmem:[#allocation6 + $0x1d4] sm:$0xf] }
  0x46   :  { %744 = vmatpush.bf16.msrb.mxu0 %v1568_v34  ;;  %1677 = vmatmul.msk.bf16.vlgmr.msrb.gmra.mxu2 %vm684_vm0, %v2125_v43  ;;  %v1540_v34 = vor.u32 %v1840_v20, %v1537_v23  ;;  %v1838_v36 = vld [vmem:[#allocation6 + $0x1e4] sm:$0xf]  ;;  %v1468_v38 = vor.u32 %v1822_v28, %v1465_v29  ;;  %v1657_v41 = vld [vmem:[#allocation6 + $0x2e8] sm:$0xf0]  ;;  %v1521_v53 = vld [vmem:[#allocation6 + $0x1d8] sm:$0xf0] }
  0x47   :  { %795 = vmatpush.bf16.msra.mxu2 %v1388_v30  ;;  %v2135_v30 = vpack.c.bf16 %v80_v15, %v80_v15  ;;  %v1870_v40 = vld [vmem:[#allocation6 + $0x2e4] sm:$0xf]  ;;  %v1868_v54 = vld [vmem:[#allocation6 + $0x2d4] sm:$0xf]  ;;  %v1649_v55 = vld [vmem:[#allocation6 + $0x2d8] sm:$0xf0] }
  0x48   :  { %783 = vmatpush.bf16.msrb.mxu3 %v1316_v35  ;;  %v1668_v35 = vor.u32 %v1872_v24, %v1665_v25  ;;  %v1660_v49 = vor.u32 %v1870_v40, %v1657_v41  ;;  %v1449_v59 = vld [vmem:[#allocation6 + $0x148] sm:$0xf0]  ;;  %v1850_v60 = vld [vmem:[#allocation6 + $0x244] sm:$0xf]  ;;  %v1848_v9 = vld [vmem:[#allocation6 + $0x234] sm:$0xf] }
  0x49   :  { %757 = vmatpush.bf16.msrb.mxu1 %v1632_v42  ;;  %v1596_v42 = vor.u32 %v1854_v32, %v1593_v33  ;;  %v1577_v61 = vld [vmem:[#allocation6 + $0x248] sm:$0xf0]  ;;  %v1834_v2 = vld [vmem:[#allocation6 + $0x1c4] sm:$0xf]  ;;  %v1569_v10 = vld [vmem:[#allocation6 + $0x238] sm:$0xf0] }
  0x4a   :  { %745 = vmatpush.bf16.msrb.mxu0 %v1560_v47  ;;  %v1585_v47 = vld [vmem:[#allocation6 + $0x258] sm:$0xf0]  ;;  %v1513_v4 = vld [vmem:[#allocation6 + $0x1c8] sm:$0xf0]  ;;  %v1866_v5 = vld [vmem:[#allocation6 + $0x2c4] sm:$0xf]  ;;  %v1580_v7 = vor.u32 %v1850_v60, %v1577_v61 }
  0x4b   :  { %796 = vmatpush.bf16.msra.mxu2 %v1380_v44  ;;  %v1820_v44 = vld [vmem:[#allocation6 + $0x154] sm:$0xf]  ;;  %v1641_v6 = vld [vmem:[#allocation6 + $0x2c8] sm:$0xf0]  ;;  %v1516_v11 = vor.u32 %v1834_v2, %v1513_v4  ;;  %v1505_v14 = vld [vmem:[#allocation6 + $0x1b8] sm:$0xf0] }
  0x4c   :  { %784 = vmatpush.bf16.msrb.mxu3 %v1308_v48  ;;  %v1532_v48 = vor.u32 %v1838_v36, %v1529_v39  ;;  %v1460_v52 = vor.u32 %v1820_v44, %v1457_v45  ;;  %v1864_v15 = vld [vmem:[#allocation6 + $0x2b4] sm:$0xf]  ;;  %v1814_v18 = vld [vmem:[#allocation6 + $0x124] sm:$0xf]  ;;  %v1433_v19 = vld [vmem:[#allocation6 + $0x128] sm:$0xf0] }
  0x4d   :  { %758 = vmatpush.bf16.msrb.mxu1 %v1624_v57  ;;  %v1588_v57 = vor.u32 %v1852_v46, %v1585_v47  ;;  %v1846_v20 = vld [vmem:[#allocation6 + $0x224] sm:$0xf]  ;;  %v1436_v25 = vor.u32 %v1814_v18, %v1433_v19  ;;  %v1625_v28 = vld [vmem:[#allocation6 + $0x2a8] sm:$0xf0]  ;;  %v1425_v32 = vld [vmem:[#allocation6 + $0x118] sm:$0xf0] }
  0x4e   :  { %746 = vmatpush.bf16.msrb.mxu0 %v1552_v62  ;;  %v1524_v62 = vor.u32 %v1836_v50, %v1521_v53  ;;  %v1830_v24 = vld [vmem:[#allocation6 + $0x1a4] sm:$0xf]  ;;  %v1844_v33 = vld [vmem:[#allocation6 + $0x214] sm:$0xf]  ;;  %v1489_v40 = vld [vmem:[#allocation6 + $0x198] sm:$0xf0] }
  0x4f   :  { %797 = vmatpush.bf16.msra.mxu2 %v1372_v58  ;;  %v1818_v58 = vld [vmem:[#allocation6 + $0x144] sm:$0xf]  ;;  %v1860_v41 = vld [vmem:[#allocation6 + $0x294] sm:$0xf]  ;;  %v1417_v46 = vld [vmem:[#allocation6 + $0x108] sm:$0xf0] }
  0x50   :  { %785 = vmatpush.bf16.msrb.mxu3 %v1300_v63  ;;  %v1652_v63 = vor.u32 %v1868_v54, %v1649_v55  ;;  %v1452_v3 = vor.u32 %v1818_v58, %v1449_v59  ;;  %v1862_v27 = vld [vmem:[#allocation6 + $0x2a4] sm:$0xf]  ;;  %v1481_v54 = vld [vmem:[#allocation6 + $0x188] sm:$0xf0]  ;;  %v188_v2 = vld [vmem:[%s2211_s3] sm:$0x3] }
  0x51   :  { %759 = vmatpush.bf16.msrb.mxu1 %v1616_v8  ;;  %v1816_v8 = vld [vmem:[#allocation6 + $0x134] sm:$0xf]  ;;  %v1628_v36 = vor.u32 %v1862_v27, %v1625_v28  ;;  %v1810_v45 = vld [vmem:[#allocation6 + $0x104] sm:$0xf]  ;;  %v1609_v58 = vld [vmem:[#allocation6 + $0x288] sm:$0xf0] }
  0x52   :  { %747 = vmatpush.bf16.msrb.mxu0 %v1544_v16  ;;  %v1633_v16 = vld [vmem:[#allocation6 + $0x2b8] sm:$0xf0]  ;;  %v1842_v47 = vld [vmem:[#allocation6 + $0x204] sm:$0xf]  ;;  %v1673_v60 = vld [vmem:[#allocation6 + $0x308] sm:$0xf0] }
  0x53   :  { %798 = vmatpush.bf16.msra.mxu2 %v1364_v12  ;;  %v1832_v12 = vld [vmem:[#allocation6 + $0x1b4] sm:$0xf]  ;;  %v1636_v23 = vor.u32 %v1864_v15, %v1633_v16  ;;  %v1826_v53 = vld [vmem:[#allocation6 + $0x184] sm:$0xf] }
  0x54   :  { %786 = vmatpush.bf16.msrb.mxu3 %v1292_v17  ;;  %v1572_v17 = vor.u32 %v1848_v9, %v1569_v10  ;;  %v1874_v59 = vld [vmem:[#allocation6 + $0x304] sm:$0xf]  ;;  %v1484_v61 = vor.u32 %v1826_v53, %v1481_v54 }
  0x55   :  { %760 = vmatpush.bf16.msrb.mxu1 %v1608_v26  ;;  %748 = vmatmul.bf16.vlgmr.msrb.gmra.mxu0 %v2135_v30  ;;  %v1497_v26 = vld [vmem:[#allocation6 + $0x1a8] sm:$0xf0] }
  0x56   :  { %805 = vmatpush.bf16.msra.mxu0 %v1476_v21  ;;  %v1561_v21 = vld [vmem:[#allocation6 + $0x228] sm:$0xf0] }
  0x57   :  { %799 = vmatpush.bf16.msra.mxu2 %v1356_v31  ;;  %787 = vmatmul.bf16.vlgmr.msrb.gmra.mxu3 %v2112_v56  ;;  %v1644_v56 = vor.u32 %v1866_v5, %v1641_v6  ;;  %v1564_v29 = vor.u32 %v1846_v20, %v1561_v21  ;;  %v1812_v31 = vld [vmem:[#allocation6 + $0x114] sm:$0xf]  ;;  %v191_v21 = vperm.slane %v188_v2, 1 }
  0x58   :  { %831 = vmatpush.bf16.msra.mxu3 %v1604_v22  ;;  %761 = vmatmul.bf16.vlgmr.msrb.gmra.mxu1 %v2137_v37  ;;  %v1508_v22 = vor.u32 %v1832_v12, %v1505_v14  ;;  %v1428_v39 = vor.u32 %v1812_v31, %v1425_v32 }
  0x59   :  { %818 = vmatpush.bf16.msra.mxu1 %v1540_v34  ;;  %v1553_v34 = vld [vmem:[#allocation6 + $0x218] sm:$0xf0] }
  0x5a   :  { %806 = vmatpush.bf16.msra.mxu0 %v1468_v38  ;;  %800 = vmatmul.bf16.vlgmr.msra.gmra.mxu2 %v2116_v1  ;;  %v1441_v1 = vld [vmem:[#allocation6 + $0x138] sm:$0xf0]  ;;  %v1828_v38 = vld [vmem:[#allocation6 + $0x194] sm:$0xf]  ;;  %v1556_v44 = vor.u32 %v1844_v33, %v1553_v34 }
  0x5b   :  { %844 = vmatpush.bf16.msrb.mxu2 %v1668_v35  ;;  %v1444_v13 = vor.u32 %v1816_v8, %v1441_v1  ;;  %v1500_v35 = vor.u32 %v1830_v24, %v1497_v26 }
  0x5c   :  { %832 = vmatpush.bf16.msra.mxu3 %v1596_v42  ;;  %v1617_v42 = vld [vmem:[#allocation6 + $0x298] sm:$0xf0] }
  0x5d   :  { %819 = vmatpush.bf16.msra.mxu1 %v1532_v48  ;;  %v1545_v48 = vld [vmem:[#allocation6 + $0x208] sm:$0xf0]  ;;  %v1620_v50 = vor.u32 %v1860_v41, %v1617_v42 }
  0x5e   :  { %807 = vmatpush.bf16.msra.mxu0 %v1460_v52  ;;  %v1420_v52 = vor.u32 %v1810_v45, %v1417_v46  ;;  %v1548_v55 = vor.u32 %v1842_v47, %v1545_v48  ;;  %v2040_v48 = vmov 2048.0  }
  0x5f   :  { %845 = vmatpush.bf16.msrb.mxu2 %v1660_v49  ;;  %v1492_v49 = vor.u32 %v1828_v38, %v1489_v40  ;;  %1929 = vrcp.f32 %v2040_v48 }
  0x60   :  { %833 = vmatpush.bf16.msra.mxu3 %v1588_v57  ;;  %v1858_v57 = vld [vmem:[#allocation6 + $0x284] sm:$0xf] }
  0x61   :  { %820 = vmatpush.bf16.msra.mxu1 %v1524_v62  ;;  %v1612_v62 = vor.u32 %v1858_v57, %v1609_v58 }
  0x62   :  { %808 = vmatpush.bf16.msra.mxu0 %v1452_v3  ;;  %v190_v3 = vperm.slane %v188_v2, 0 }
  0x63   :  { %846 = vmatpush.bf16.msrb.mxu2 %v1652_v63  ;;  %v1676_v63 = vor.u32 %v1874_v59, %v1673_v60 }
  0x64   :  { %834 = vmatpush.bf16.msra.mxu3 %v1580_v7 }
  0x65   :  { %821 = vmatpush.bf16.msra.mxu1 %v1516_v11 }
  0x66   :  { %809 = vmatpush.bf16.msra.mxu0 %v1444_v13 }
  0x67   :  { %847 = vmatpush.bf16.msrb.mxu2 %v1644_v56 }
  0x68   :  { %835 = vmatpush.bf16.msra.mxu3 %v1572_v17 }
  0x69   :  { %822 = vmatpush.bf16.msra.mxu1 %v1508_v22 }
  0x6a   :  { %810 = vmatpush.bf16.msra.mxu0 %v1436_v25 }
  0x6b   :  { %848 = vmatpush.bf16.msrb.mxu2 %v1636_v23 }
  0x6c   :  { %836 = vmatpush.bf16.msra.mxu3 %v1564_v29 }
  0x6d   :  { %823 = vmatpush.bf16.msra.mxu1 %v1500_v35 }
  0x6e   :  { %811 = vmatpush.bf16.msra.mxu0 %v1428_v39 }
  0x6f   :  { %849 = vmatpush.bf16.msrb.mxu2 %v1628_v36 }
  0x70   :  { %837 = vmatpush.bf16.msra.mxu3 %v1556_v44 }
  0x71   :  { %824 = vmatpush.bf16.msra.mxu1 %v1492_v49  ;;  %v1930_v49 = vpop.eup %1929 }
  0x72   :  { %812 = vmatpush.bf16.msra.mxu0 %v1420_v52  ;;  %vm885_vm1 = vweird.f32 %v1930_v49 }
  0x73   :  { %850 = vmatpush.bf16.msrb.mxu2 %v1620_v50  ;;  %v881_v50 = vmul.f32 2048.0, %v1930_v49 }
  0x74   :  { %838 = vmatpush.bf16.msra.mxu3 %v1548_v55 }
  0x75   :  { %825 = vmatpush.bf16.msra.mxu1 %v1484_v61  ;;  %813 = vmatmul.bf16.vlgmr.msra.gmra.mxu0 %v2104_v51  ;;  %v882_v52 = vsub.f32 1.0, %v881_v50 }
  0x77   :  { %839 = vmatmul.bf16.vlgmr.msra.gmra.mxu3 %v2135_v30  ;;  %851 = vmatpush.bf16.msrb.mxu2 %v1612_v62  ;;  %v883_v57 = vmul.f32 %v1930_v49, %v882_v52 }
  0x78   :  { %826 = vmatmul.bf16.vlgmr.msra.gmra.mxu1 %v2114_v0 }
  0x79   :  { %v884_v60 = vadd.f32 %v1930_v49, %v883_v57 }
  0x7a   :  { %852 = vmatmul.bf16.vlgmr.msrb.gmra.mxu2 %v2137_v37 }
  0x7b   :  { %864 = vmatpush.bf16.msra.mxu2 %v1676_v63 }
  0x8a   :  { %1678 = vmatmul.msk.bf16.vlgmr.msra.gmra.mxu2 %vm684_vm0, %v2125_v43 }
  0xb2   :  { %v697_v4 = vpop.f32.mrf.mxu0 }
  0xb3   :  { %v698_v5 = vadd.f32 %v697_v4, %v190_v3  ;;  %v886_v4 = vsel %vm885_vm1, %v1930_v49, %v884_v60  ;;  %v2042_v49 = vmov 1024.0  }
  0xb5   :  { %v710_v6 = vpop.f32.mrf.mxu1 }
  0xb6   :  { %v711_v51 = vadd.f32 %v710_v6, %v698_v5 }
  0xb9   :  { %v723_v7 = vpop.f32.mrf.mxu2 }
  0xba   :  { %v724_v30 = vadd.f32 %v723_v7, %v711_v51  ;;  %v736_v8 = vpop.f32.mrf.mxu3  ;;  %v699_v1 = vpop.f32.mrf.mxu0 }
  0xbb   :  { %v1882_v1 = vld [vmem:[#allocation7 + $0x30] sm:$0xff] }
  0xbc   :  { %v737_v9 = vadd.f32 %v736_v8, %v724_v30  ;;  %v1883_v30 = vld [vmem:[#allocation7 + $0x38] sm:$0xff] }
  0xbd   :  { %v712_v0 = vpop.f32.mrf.mxu1  ;;  %v1891_v8 = vld [vmem:[#allocation7 + $0x78] sm:$0xff]  ;;  %1076 = vmatpush.bf16.msrb.mxu1 %v1883_v30 }
  0xbe   :  { %1089 = vmatpush.bf16.msrb.mxu3 %v1891_v8  ;;  %v1881_v0 = vld [vmem:[#allocation7 + $0x28] sm:$0xff] }
  0xbf   :  { %v1899_v8 = vld [vmem:[%s2214_s6 + $0x38] sm:$0xff] }
  0xc0   :  { %1236 = vmatpush.bf16.msrb.mxu0 %v1899_v8 }
  0xc1   :  { %v725_v10 = vpop.f32.mrf.mxu2  ;;  %1077 = vmatpush.bf16.msrb.mxu1 %v1882_v1  ;;  %v1898_v1 = vld [vmem:[%s2214_s6 + $0x30] sm:$0xff] }
  0xc2   :  { %v738_v37 = vpop.f32.mrf.mxu3  ;;  %v1889_v10 = vld [vmem:[#allocation7 + $0x68] sm:$0xff] }
  0xc3   :  { %v1880_v37 = vld [vmem:[#allocation7 + $0x20] sm:$0xff] }
  0xc4   :  { %1237 = vmatpush.bf16.msrb.mxu0 %v1898_v1 }
  0xc5   :  { %1078 = vmatpush.bf16.msrb.mxu1 %v1881_v0  ;;  %v1896_v0 = vld [vmem:[%s2214_s6 + $0x20] sm:$0xff] }
  0xc9   :  { %v775_v11 = vpop.f32.mrf.mxu2  ;;  %1079 = vmatpush.bf16.msrb.mxu1 %v1880_v37  ;;  %v1895_v37 = vld [vmem:[%s2214_s6 + $0x18] sm:$0xff] }
  0xd1   :  { %v777_v43 = vpop.f32.mrf.mxu2 }
  0xd2   :  { %v749_v56 = vpop.f32.mrf.mxu0  ;;  %v1879_v43 = vld [vmem:[#allocation7 + $0x18] sm:$0xff] }
  0xd3   :  { %v750_v32 = vadd.f32 %v749_v56, %v737_v9  ;;  %v1890_v9 = vld [vmem:[#allocation7 + $0x70] sm:$0xff]  ;;  %1080 = vmatpush.bf16.msrb.mxu1 %v1879_v43 }
  0xd4   :  { %1090 = vmatpush.bf16.msrb.mxu3 %v1890_v9  ;;  %v1897_v9 = vld [vmem:[%s2214_s6 + $0x28] sm:$0xff] }
  0xd5   :  { %v762_v12 = vpop.f32.mrf.mxu1  ;;  %1238 = vmatpush.bf16.msrb.mxu0 %v1897_v9 }
  0xd6   :  { %v763_v35 = vadd.f32 %v762_v12, %v750_v32  ;;  %v1887_v12 = vld [vmem:[#allocation7 + $0x58] sm:$0xff] }
  0xd8   :  { %v776_v39 = vadd.f32 %v775_v11, %v763_v35  ;;  %1091 = vmatpush.bf16.msrb.mxu3 %v1889_v10  ;;  %v1888_v11 = vld [vmem:[#allocation7 + $0x60] sm:$0xff] }
  0xd9   :  { %1239 = vmatpush.bf16.msrb.mxu0 %v1896_v0 }
  0xda   :  { %v751_v13 = vpop.f32.mrf.mxu0  ;;  %v788_v15 = vpop.f32.mrf.mxu3  ;;  %v889_v46 = vmul.f32 %v776_v39, %v776_v39 }
  0xdb   :  { %v789_v24 = vadd.f32 %v788_v15, %v191_v21  ;;  %v1886_v21 = vld [vmem:[#allocation7 + $0x50] sm:$0xff] }
  0xdc   :  { %1092 = vmatpush.bf16.msrb.mxu3 %v1888_v11 }
  0xdd   :  { %v801_v14 = vpop.f32.mrf.mxu2  ;;  %v764_v16 = vpop.f32.mrf.mxu1  ;;  %1240 = vmatpush.bf16.msrb.mxu0 %v1895_v37 }
  0xde   :  { %v802_v27 = vadd.f32 %v801_v14, %v789_v24  ;;  %v1876_v24 = vld [vmem:[#allocation7] sm:$0xff] }
  0xe0   :  { %1093 = vmatpush.bf16.msrb.mxu3 %v1887_v12 }
  0xe2   :  { %v790_v18 = vpop.f32.mrf.mxu3 }
  0xe4   :  { %1094 = vmatpush.bf16.msrb.mxu3 %v1886_v21 }
  0xe5   :  { %v803_v17 = vpop.f32.mrf.mxu2 }
  0xf2   :  { %v814_v19 = vpop.f32.mrf.mxu0 }
  0xf3   :  { %v815_v28 = vadd.f32 %v814_v19, %v802_v27 }
  0xf5   :  { %v827_v20 = vpop.f32.mrf.mxu1 }
  0xf6   :  { %v828_v33 = vadd.f32 %v827_v20, %v815_v28  ;;  %v1878_v20 = vld [vmem:[#allocation7 + $0x10] sm:$0xff] }
  0xf7   :  { %1081 = vmatpush.bf16.msrb.mxu1 %v1878_v20 }
  0xfa   :  { %v840_v22 = vpop.f32.mrf.mxu3  ;;  %v816_v23 = vpop.f32.mrf.mxu0 }
  0xfb   :  { %v841_v34 = vadd.f32 %v840_v22, %v828_v33  ;;  %v1877_v22 = vld [vmem:[#allocation7 + $0x8] sm:$0xff] }
  0xfc   :  { %v1885_v23 = vld [vmem:[#allocation7 + $0x48] sm:$0xff]  ;;  %1082 = vmatpush.bf16.msrb.mxu1 %v1877_v22 }
  0xfd   :  { %v853_v25 = vpop.f32.mrf.mxu2  ;;  %v829_v26 = vpop.f32.mrf.mxu1  ;;  %1095 = vmatpush.bf16.msrb.mxu3 %v1885_v23 }
  0xfe   :  { %v854_v36 = vadd.f32 %v853_v25, %v841_v34  ;;  %v1884_v25 = vld [vmem:[#allocation7 + $0x40] sm:$0xff] }
 0x100   :  { %1083 = vmatpush.bf16.msrb.mxu1 %v1876_v24 }
 0x101   :  { %1096 = vmatpush.bf16.msrb.mxu3 %v1884_v25 }
 0x102   :  { %v842_v29 = vpop.f32.mrf.mxu3 }
 0x105   :  { %v855_v31 = vpop.f32.mrf.mxu2 }
 0x10d   :  { %v866_v38 = vpop.f32.mrf.mxu2 }
 0x10e   :  { %v867_v40 = vadd.f32 %v866_v38, %v854_v36 }
 0x110   :  { %v2152_v41 = vpack.c.bf16 %v867_v40, %v776_v39  ;;  %v870_v42 = vadd.f32 %v867_v40, %v776_v39  ;;  %v890_v44 = vmul.f32 %v867_v40, %v867_v40 }
 0x112   :  { %871 = vadd.xlane.f32.xlu0 %v870_v42  ;;  %v891_v47 = vadd.f32 %v890_v44, %v889_v46  ;;  %v932_v27 = vunpack.c.l.bf16 %v2152_v41  ;;  %v933_v28 = vunpack.c.h.bf16 %v2152_v41  ;;  %v1927_v42 = vld [vmem:[%s2213_s5] ss:$0 sm:$0xff] }
 0x115   :  { %v868_v45 = vpop.f32.mrf.mxu2 }
 0x11a   :  { %892 = vadd.xlane.f32.xlu0 %v891_v47 }
 0x185   :  { %v872_v53 = vpop.xlane.xlu0 %871 }
 0x186   :  { %v873_v54 = vrot.slane %v872_v53, 4 }
 0x188   :  { %v874_v55 = vadd.f32 %v873_v54, %v872_v53 }
 0x18a   :  { %v875_v58 = vrot.slane %v874_v55, 2 }
 0x18c   :  { %v876_v59 = vadd.f32 %v875_v58, %v874_v55 }
 0x18d   :  { %v893_v61 = vpop.xlane.xlu0 %892 }
 0x18e   :  { %v894_v62 = vrot.slane %v893_v61, 4  ;;  %v877_v63 = vrot.slane %v876_v59, 1 }
 0x190   :  { %v895_v2 = vadd.f32 %v894_v62, %v893_v61  ;;  %v878_v3 = vadd.f32 %v877_v63, %v876_v59 }
 0x192   :  { %v896_v5 = vrot.slane %v895_v2, 2  ;;  %1900 = vpush %v878_v3 }
 0x193   :  { %1902 = vpush %v886_v4 }
 0x194   :  { %v897_v6 = vadd.f32 %v896_v5, %v895_v2 }
 0x196   :  { %v898_v51 = vrot.slane %v897_v6, 1 }
 0x198   :  { %v899_v7 = vadd.f32 %v898_v51, %v897_v6 }
 0x19a   :  { %1904 = vpush %v899_v7 }
 0x1c3   :  { %s1901_s3 = spop %1900 }
 0x1c4   :  { %s1903_s13 = spop %1902 }
 0x1c5   :  { %s2154_s14 = smul.f32 %s1903_s13, %s1901_s3 }
 0x1c7   :  { %s910_s15 = smul.f32 %s2154_s14, %s2154_s14 }
 0x1cb   :  { %s1905_s16 = spop %1904 }
 0x1cc   :  { %s909_s17 = smul.f32 %s1905_s16, %s1903_s13 }
 0x1ce   :  { %s911_s18 = ssub.f32 %s909_s17, %s910_s15 }
 0x1d0   :  { %s912_s19 = smax.f32 %s2041_s0, %s911_s18 }
 0x1d1   :  { %s914_s20 = sadd.f32 1e-05, %s912_s19 }
 0x1d3   :  { %v915_v56 = vstv %s914_s20 }
 0x1d4   :  { %1931 = vrsqrt.f32 %v915_v56  ;;  %vm922_vm3 = vweird.f32 %v915_v56 }
 0x1d5   :  { %1933 = vrcp.f32 %v2042_v49 }
 0x1da   :  { %v1932_v13 = vpop.eup %1931 }
 0x1db   :  { %v917_v14 = vmul.f32 %v1932_v13, %v915_v56  ;;  %vm923_vm2 = vweird.f32 %v1932_v13  ;;  %v1934_v50 = vpop.eup %1933 }
 0x1dc   :  { %vm924_vm4 = vmor %vm922_vm3, %vm923_vm2  ;;  %v1112_v52 = vmul.f32 1024.0, %v1934_v50  ;;  %vm1116_vm5 = vweird.f32 %v1934_v50 }
 0x1dd   :  { %v918_v15 = vmul.f32 %v1932_v13, %v917_v14 }
 0x1de   :  { %v1113_v53 = vsub.f32 1.0, %v1112_v52 }
 0x1df   :  { %v919_v16 = vmul.f32 0.5, %v918_v15 }
 0x1e0   :  { %v1114_v58 = vmul.f32 %v1934_v50, %v1113_v53 }
 0x1e1   :  { %v920_v17 = vsub.f32 1.5, %v919_v16  ;;  %v1894_v16 = vld [vmem:[%s2214_s6 + $0x10] sm:$0xff] }
 0x1e2   :  { %v1115_v61 = vadd.f32 %v1934_v50, %v1114_v58  ;;  %1241 = vmatpush.bf16.msrb.mxu0 %v1894_v16 }
 0x1e3   :  { %v921_v18 = vmul.f32 %v1932_v13, %v920_v17  ;;  %v1893_v17 = vld [vmem:[%s2214_s6 + $0x8] sm:$0xff] }
 0x1e4   :  { %v1117_v5 = vsel %vm1116_vm5, %v1934_v50, %v1115_v61 }
 0x1e5   :  { %v925_v19 = vsel %vm924_vm4, %v1932_v13, %v921_v18  ;;  %v1892_v18 = vld [vmem:[%s2214_s6] sm:$0xff] }
 0x1e6   :  { %1906 = vpush %v925_v19  ;;  %1242 = vmatpush.bf16.msrb.mxu0 %v1893_v17 }
 0x1ea   :  { %1243 = vmatpush.bf16.msrb.mxu0 %v1892_v18 }
 0x217   :  { %s1907_s4 = spop %1906 }
 0x218   :  { %s927_s22 = smul.f32 %s1907_s4, %s913_s21 }
 0x21a   :  { %s929_s23 = smul.f32 %s927_s22, %s2154_s14  ;;  %v934_v26 = vstv %s927_s22 }
 0x21b   :  { %v935_v29 = vmul.f32 %v934_v26, %v932_v27  ;;  %v936_v31 = vmul.f32 %v934_v26, %v933_v28  ;;  %v1249_v27 = vlaneseq }
 0x21c   :  { %s930_s24 = ssub.f32 %s1679_s2, %s929_s23 }
 0x21d   :  { %v1250_v28 = vand.u32 127, %v1249_v27 }
 0x21e   :  { %v937_v32 = vstv %s930_s24  ;;  %s1744_s24 = sld [smem:[#allocation2 + $0x2]] }
 0x21f   :  { %v938_v33 = vadd.f32 %v937_v32, %v935_v29  ;;  %v939_v34 = vadd.f32 %v937_v32, %v936_v31  ;;  %v1928_v29 = vld [vmem:[%s2215_s7] ss:$0 sm:$0xff]  ;;  %vm1251_vm9 = vcmp.lt.s32.totalorder %v1250_v28, 10 }
 0x221   :  { %v940_v35 = vmax.f32 %v938_v33, 0.0  ;;  %v941_v36 = vmax.f32 %v939_v34, 0.0 }
 0x223   :  { %v942_v38 = vpack.c.bf16 %v940_v35, %v940_v35  ;;  %v943_v39 = vpack.c.bf16 %v941_v36, %v941_v36 }
 0x225   :  { %1084 = vmatmul.bf16.vlgmr.msrb.gmra.mxu1 %v942_v38  ;;  %1097 = vmatmul.bf16.vlgmr.msrb.gmra.mxu3 %v943_v39 }
 0x2a2   :  { %v1085_v40 = vpop.f32.mrf.mxu1 }
 0x2a3   :  { %v1086_v44 = vadd.f32 %v1927_v42, %v1085_v40 }
 0x2a8   :  { %v1098_v45 = vpop.f32.mrf.mxu3 }
 0x2a9   :  { %v2165_v41 = vadd.f32 %v1098_v45, %v1086_v44 }
 0x2aa   :  { %v1087_v46 = vpop.f32.mrf.mxu1 }
 0x2ab   :  { %1102 = vadd.xlane.f32.xlu1 %v2165_v41  ;;  %v1120_v48 = vmul.f32 %v2165_v41, %v2165_v41  ;;  %v1160_v19 = vpack.c.bf16 %v2165_v41, %v2165_v41 }
 0x2ad   :  { %v1161_v21 = vunpack.c.l.bf16 %v1160_v19 }
 0x2b0   :  { %v1100_v47 = vpop.f32.mrf.mxu3 }
 0x2b3   :  { %1121 = vadd.xlane.f32.xlu1 %v1120_v48 }
 0x31e   :  { %v1103_v54 = vpop.xlane.xlu1 %1102 }
 0x31f   :  { %v1104_v55 = vrot.slane %v1103_v54, 4 }
 0x321   :  { %v1105_v57 = vadd.f32 %v1104_v55, %v1103_v54 }
 0x323   :  { %v1106_v59 = vrot.slane %v1105_v57, 2 }
 0x325   :  { %v1107_v60 = vadd.f32 %v1106_v59, %v1105_v57 }
 0x326   :  { %v1122_v62 = vpop.xlane.xlu1 %1121 }
 0x327   :  { %v1123_v63 = vrot.slane %v1122_v62, 4  ;;  %v1108_v2 = vrot.slane %v1107_v60, 1 }
 0x329   :  { %v1124_v3 = vadd.f32 %v1123_v63, %v1122_v62  ;;  %v1109_v4 = vadd.f32 %v1108_v2, %v1107_v60 }
 0x32b   :  { %v1125_v6 = vrot.slane %v1124_v3, 2  ;;  %1908 = vpush %v1109_v4 }
 0x32c   :  { %1910 = vpush %v1117_v5 }
 0x32d   :  { %v1126_v51 = vadd.f32 %v1125_v6, %v1124_v3 }
 0x32f   :  { %v1127_v7 = vrot.slane %v1126_v51, 1 }
 0x331   :  { %v1128_v30 = vadd.f32 %v1127_v7, %v1126_v51 }
 0x333   :  { %1912 = vpush %v1128_v30 }
 0x35c   :  { %s1909_s5 = spop %1908 }
 0x35d   :  { %s1911_s27 = spop %1910 }
 0x35e   :  { %s2173_s30 = smul.f32 %s1911_s27, %s1909_s5 }
 0x360   :  { %s1139_s11 = smul.f32 %s2173_s30, %s2173_s30 }
 0x364   :  { %s1913_s1 = spop %1912 }
 0x365   :  { %s1138_s12 = smul.f32 %s1913_s1, %s1911_s27 }
 0x367   :  { %s1140_s14 = ssub.f32 %s1138_s12, %s1139_s11  ;;  %s1273_s11 = sshll.u32 %s2216_s8, 4  ;;  %s1274_s11 = int_to_ptr.hbm [resolvable:$true] %s1273_s11 }
 0x369   :  { %s1141_s15 = smax.f32 %s2041_s0, %s1140_s14 }
 0x36a   :  { %s1143_s18 = sadd.f32 1e-05, %s1141_s15 }
 0x36c   :  { %v1144_v10 = vstv %s1143_s18 }
 0x36d   :  { %1935 = vrsqrt.f32 %v1144_v10  ;;  %vm1151_vm7 = vweird.f32 %v1144_v10 }
 0x373   :  { %v1936_v11 = vpop.eup %1935 }
 0x374   :  { %v1146_v56 = vmul.f32 %v1936_v11, %v1144_v10  ;;  %vm1152_vm6 = vweird.f32 %v1936_v11 }
 0x375   :  { %vm1153_vm8 = vmor %vm1151_vm7, %vm1152_vm6 }
 0x376   :  { %v1147_v43 = vmul.f32 %v1936_v11, %v1146_v56 }
 0x378   :  { %v1148_v12 = vmul.f32 0.5, %v1147_v43 }
 0x37a   :  { %v1149_v13 = vsub.f32 1.5, %v1148_v12 }
 0x37c   :  { %v1150_v14 = vmul.f32 %v1936_v11, %v1149_v13 }
 0x37e   :  { %v1154_v15 = vsel %vm1153_vm8, %v1936_v11, %v1150_v14 }
 0x37f   :  { %1914 = vpush %v1154_v15 }
 0x3b0   :  { %s1915_s26 = spop %1914 }
 0x3b1   :  { %s1156_s5 = smul.f32 %s1915_s26, %s1744_s24 }
 0x3b3   :  { %s1158_s27 = smul.f32 %s1156_s5, %s2173_s30  ;;  %v1162_v20 = vstv %s1156_s5  ;;  %s2043_s30 = smov [#allocation9]  }
 0x3b4   :  { %v1163_v22 = vmul.f32 %v1162_v20, %v1161_v21  ;;  %s1271_s9 = sshll.u32 %s2043_s30, 4  ;;  %s1272_s9 = int_to_ptr.vmem [resolvable:$true] %s1271_s9 }
 0x3b5   :  { %s1159_s28 = ssub.f32 %s1745_s25, %s1158_s27 }
 0x3b7   :  { %v1164_v23 = vstv %s1159_s28 }
 0x3b8   :  { %v1165_v24 = vadd.f32 %v1164_v23, %v1163_v22 }
 0x3ba   :  { %v1166_v25 = vmax.f32 %v1165_v24, 0.0 }
 0x3bc   :  { %v1167_v26 = vpack.c.bf16 %v1166_v25, %v1166_v25 }
 0x3be   :  { %1244 = vmatmul.bf16.vlgmr.msrb.gmra.mxu0 %v1167_v26 }
 0x43b   :  { %v1245_v31 = vpop.f32.mrf.mxu0 }
 0x43c   :  { %v1246_v32 = vadd.f32 %v1928_v29, %v1245_v31 }
 0x43e   :  { %v1252_v33 = vsel %vm1251_vm9, %v1246_v32, -1e+30 }
 0x43f   :  { %1253 = vmax.xlane.f32.xlu2 %v1252_v33 }
 0x443   :  { %v1247_v34 = vpop.f32.mrf.mxu0 }
 0x4b2   :  { %v1254_v35 = vpop.xlane.xlu2 %1253 }
 0x4b3   :  { %v1255_v36 = vsub.f32 %v1252_v33, %v1254_v35 }
 0x4b5   :  { %v1256_v38 = vmul.f32 1.442695, %v1255_v36 }
 0x4b7   :  { %1937 = vpow2.f32 %v1256_v38 }
 0x4bd   :  { %v1938_v39 = vpop.eup %1937 }
 0x4be   :  { %1258 = vadd.xlane.f32.xlu2 %v1938_v39 }
 0x531   :  { %v1259_v40 = vpop.xlane.xlu2 %1258 }
 0x532   :  { %1939 = vrcp.f32 %v1259_v40 }
 0x538   :  { %v1940_v42 = vpop.eup %1939 }
 0x539   :  { %v1261_v44 = vmul.f32 %v1940_v42, %v1259_v40 }
 0x53b   :  { %v1262_v45 = vsub.f32 2.0, %v1261_v44 }
 0x53d   :  { %v1263_v41 = vmul.f32 %v1940_v42, %v1262_v45 }
 0x53f   :  { %v1264_v46 = vmul.f32 %v1938_v39, %v1263_v41 }
 0x541   :  { %1265 = vst [vmem:[#allocation9] sm:$0xff] %v1264_v46 }
 0x542   :  { %1276 = dma.vmem_to_hbm [thread:$0]  %s1272_s9, 128, %s1274_s11, [#allocation4]  }
 0x543   :  { %2031 = dma.done.wait [#allocation4], 128  }
 0x544   :  { %2032 = vsyncadd [#allocation4], 4294967168 }
 0x545   :  { %1281 = vsyncpa [#allocation3], 1 }
 0x546   :  { %1282 = vsyncpa [#allocation8], 1 }
 0x547   :  { %1283 = vsyncpa [#allocation4], 1 }
 0x548   :  { %1284 = vsyncpa [#allocation5], 1 }

</bundles_post_ra>
